<compile_context>
chip_gen: v7x
topology: tpu7x:2x2x1
jax: 0.10.0
libtpu: 0.0.40
codegen_flags: <defaults>
</compile_context>

<pallas_src>
import functools
import math

import jax
import jax.numpy as jnp
from jax import lax
from jax.experimental import pallas as pl
from jax.experimental.pallas import tpu as pltpu


def _round_up(x, m):
    return ((x + m - 1) // m) * m


def _gather_kernel(ids_ref, table_ref, out_ref, *, scale, vocab):
    """Primary path: true row gather from the VMEM-resident table."""
    # ids_ref:   (T, 1)      int32 token ids for this block (ragged-tail rows
    #                        may contain stale values -> clamp before use).
    # table_ref: (vocab, D)  embedding table, resident in VMEM across steps.
    # out_ref:   (T, D)      lane-/sublane-dense output tile.
    ids = jnp.clip(ids_ref[...][:, 0], 0, vocab - 1)            # (T,) int32
    rows = jnp.take(table_ref[...], ids, axis=0, mode="clip")   # (T, D)
    out_ref[...] = (rows * scale).astype(out_ref.dtype)


def _onehot_kernel(ids_ref, table_ref, out_ref, *, scale, vocab, vocab_chunk):
    """Fallback path: chunked one-hot @ table matmul (always lowers; exact)."""
    t_block = out_ref.shape[0]
    ids = ids_ref[...]                                           # (T, 1) int32
    acc = jnp.zeros(out_ref.shape, jnp.float32)
    for start in range(0, vocab, vocab_chunk):                   # static chunks
        size = min(vocab_chunk, vocab - start)
        col = lax.broadcasted_iota(jnp.int32, (t_block, size), 1) + start
        onehot = (ids == col).astype(table_ref.dtype)            # (T, size)
        acc = acc + jnp.dot(onehot, table_ref[pl.ds(start, size), :],
                            preferred_element_type=jnp.float32)
    out_ref[...] = (acc * scale).astype(out_ref.dtype)


def _build_call(kernel, n_tokens, t_block, vocab, d_model, out_dtype, itemsize):
    n_blocks = (n_tokens + t_block - 1) // t_block
    # Explicit scoped-VMEM budget: double-buffered table + ids/out tiles
    # (+ margin for compiler temporaries).  Big tables belong on the DMA-gather
    # path (see TODO above), so cap at 100 MiB.
    table_bytes = vocab * d_model * itemsize
    out_bytes = t_block * d_model * itemsize
    ids_bytes = t_block * 4
    vmem_limit = int(min(2 * (table_bytes + out_bytes + ids_bytes) + (4 << 20),
                         100 << 20))
    return pl.pallas_call(
        kernel,
        out_shape=jax.ShapeDtypeStruct((n_tokens, d_model), out_dtype),
        grid_spec=pltpu.PrefetchScalarGridSpec(
            num_scalar_prefetch=0,
            grid=(n_blocks,),
            in_specs=[
                # Per-step block of token ids (tiny sublane-dense column).
                pl.BlockSpec((t_block, 1), lambda i: (i, 0)),
                # Whole table, constant block index -> stays resident in VMEM
                # and is read from HBM exactly once.
                pl.BlockSpec((vocab, d_model), lambda i: (0, 0)),
            ],
            out_specs=pl.BlockSpec((t_block, d_model), lambda i: (i, 0)),
        ),
        compiler_params=pltpu.CompilerParams(
            dimension_semantics=("parallel",),
            vmem_limit_bytes=vmem_limit,
        ),
    )


def token_embedding(ids, table, *, block_tokens=512, impl="auto",
                    vocab_chunk=128):
    """ids: int array [seq_len, batch]; table: float array [vocab, d_model].

    Returns [seq_len, batch, d_model] = table[ids] * sqrt(d_model).
    """
    seq_len, batch = ids.shape
    vocab, d_model = table.shape
    n_tokens = seq_len * batch
    scale = math.sqrt(d_model)

    # Token block: multiple of 8 (sublane-dense). The grid handles a ragged
    # tail block directly, so there is no id padding and no output slice.
    t_block = min(_round_up(block_tokens, 8), _round_up(n_tokens, 8))
    ids_col = ids.reshape(n_tokens, 1).astype(jnp.int32)
    itemsize = jnp.dtype(table.dtype).itemsize

    def run(which):
        if which == "gather":
            kern = functools.partial(_gather_kernel, scale=scale, vocab=vocab)
        else:
            kern = functools.partial(_onehot_kernel, scale=scale, vocab=vocab,
                                     vocab_chunk=min(vocab_chunk, vocab))
        call = _build_call(kern, n_tokens, t_block, vocab, d_model,
                           table.dtype, itemsize)
        return call(ids_col, table)

    if impl == "auto":
        try:
            # block here so any lowering/compile issue with the gather pattern
            # surfaces inside the try and we can fall back.
            out_flat = jax.block_until_ready(run("gather"))
        except Exception:
            out_flat = run("onehot")
    else:
        out_flat = run(impl)

    return out_flat.reshape(seq_len, batch, d_model)


if __name__ == "__main__":
    # Small deterministic setup consistent with the module's forward:
    # x: [seq_len, batch_size] integer token ids.
    vocab_size = 64
    d_model = 128
    seq_len = 24
    batch_size = 3

    key = jax.random.PRNGKey(0)
    k_ids, k_emb = jax.random.split(key)

    # nn.Embedding default init ~ N(0, 1), deterministic via PRNGKey(0).
    table = jax.random.normal(k_emb, (vocab_size, d_model), dtype=jnp.float32)
    x = jax.random.randint(k_ids, (seq_len, batch_size), 0, vocab_size,
                           dtype=jnp.int32)

    # Pure-JAX reference (embedding lookup * sqrt(d_model)).
    ref = jnp.take(table, x, axis=0) * math.sqrt(d_model)

    # block_tokens=32 forces a multi-step grid with a ragged tail block
    # (72 tokens -> blocks of 32, 32, 8-valid), exercising the general path.
    out = jax.block_until_ready(token_embedding(x, table, block_tokens=32))
    assert out.shape == (seq_len, batch_size, d_model)
    assert out.dtype == jnp.float32
    assert jnp.allclose(out, ref, atol=1e-5, rtol=1e-5)

    # Default config (single 72-token block) as well.
    out2 = jax.block_until_ready(token_embedding(x, table))
    assert jnp.allclose(out2, ref, atol=1e-5, rtol=1e-5)

    print("KERNEL_OK")
</pallas_src>

<mosaic_0001>
module attributes {stable_mosaic.version = 11 : i64} {
  func.func @_onehot_kernel(%arg0: i32, %arg1: memref<32x1xi32, #tpu.memory_space<vmem>>, %arg2: memref<64x128xf32, #tpu.memory_space<vmem>>, %arg3: memref<32x128xf32, #tpu.memory_space<vmem>>) attributes {dimension_semantics = [#tpu.dimension_semantics<parallel>], iteration_bounds = array<i64: 3>, scalar_prefetch = 0 : i64, scratch_operands = 0 : i64, tpu.core_type = #tpu.core_type<tc>, window_params = [{transform_indices = @transform_0, window_bounds = array<i64: 32, 1>}, {pipeline_mode = #tpu.pipeline_mode<synchronous>, transform_indices = @transform_1, window_bounds = array<i64: 64, 128>}, {transform_indices = @transform_2, window_bounds = array<i64: 32, 128>}]} {
    %c0 = arith.constant 0 : index
    %c0_0 = arith.constant 0 : index
    %0 = vector.load %arg1[%c0, %c0_0] : memref<32x1xi32, #tpu.memory_space<vmem>>, vector<32x1xi32>
    %cst = arith.constant 0.000000e+00 : f32
    %1 = vector.broadcast %cst : f32 to vector<32x128xf32>
    %2 = tpu.iota {dimensions = array<i32: 1>} : vector<32x64xi32>
    %c0_i32 = arith.constant 0 : i32
    %3 = vector.broadcast %c0_i32 : i32 to vector<32x64xi32>
    %4 = arith.addi %2, %3 : vector<32x64xi32>
    %5 = vector.broadcast %0 : vector<32x1xi32> to vector<32x64xi32>
    %6 = arith.cmpi eq, %5, %4 : vector<32x64xi32>
    %7 = arith.extui %6 : vector<32x64xi1> to vector<32x64xi32>
    %8 = arith.sitofp %7 : vector<32x64xi32> to vector<32x64xf32>
    %c0_1 = arith.constant 0 : index
    %c0_2 = arith.constant 0 : index
    %9 = vector.load %arg2[%c0_1, %c0_2] : memref<64x128xf32, #tpu.memory_space<vmem>>, vector<64x128xf32>
    %cst_3 = arith.constant dense<0.000000e+00> : vector<32x128xf32>
    %10 = tpu.matmul %8, %9, %cst_3 {dimension_numbers = #tpu.dot_dimension_numbers<[1], [0], [0], [1], [0, 0, 1, 1], [], []>} : vector<32x64xf32>, vector<64x128xf32>, vector<32x128xf32> -> vector<32x128xf32>
    %11 = arith.addf %1, %10 : vector<32x128xf32>
    %cst_4 = arith.constant 11.3137083 : f32
    %12 = vector.broadcast %cst_4 : f32 to vector<32x128xf32>
    %13 = arith.mulf %11, %12 : vector<32x128xf32>
    %c0_5 = arith.constant 0 : index
    %c0_6 = arith.constant 0 : index
    %14 = vector.load %arg3[%c0_5, %c0_6] : memref<32x128xf32, #tpu.memory_space<vmem>>, vector<32x128xf32>
    tpu.vector_store %arg3[%c0_5, %c0_6], %13 {strides = array<i32>} : memref<32x128xf32, #tpu.memory_space<vmem>>, vector<32x128xf32>,
    return
  }
  func.func @transform_0(%arg0: i32) -> (i32, i32) {
    %c0_i32 = arith.constant 0 : i32
    %c0_i32_0 = arith.constant 0 : i32
    return %arg0, %c0_i32 : i32, i32
  }
  func.func @transform_1(%arg0: i32) -> (i32, i32) {
    %c0_i32 = arith.constant 0 : i32
    %c0_i32_0 = arith.constant 0 : i32
    %c0_i32_1 = arith.constant 0 : i32
    return %c0_i32, %c0_i32_0 : i32, i32
  }
  func.func @transform_2(%arg0: i32) -> (i32, i32) {
    %c0_i32 = arith.constant 0 : i32
    %c0_i32_0 = arith.constant 0 : i32
    return %arg0, %c0_i32 : i32, i32
  }
}

</mosaic_0001>

<bundles_post_ra>
// kernel: tpu_custom_call.1
= control target key start
LH: loop header
LB: loop body
LE: loop exit
PB: predicated region body
PF: predicated region fallthrough
CT: control target
= control target key end

     0   :  { %7 = vsyncpa [#allocation3], 0  ;;  %s747_s0 = inlined_call_operand.vmem [shape: s32[72,1], index: 0, kind: input, shape index: {}]   ;;  %s748_s1 = inlined_call_operand.vmem [shape: f32[64,128], index: 1, kind: input, shape index: {}]   ;;  %s749_s2 = inlined_call_operand.hbm [shape: f32[72,128], index: 2, kind: output, shape index: {}]  }
   0x1   :  { %9 = vsyncpa [#allocation3 + $0x1], 0  ;;  %s606_s9 = smov 0   ;;  %s608_s10 = smov 0  }
   0x2   :  { %s610_s11 = smov 0   ;;  %s612_s12 = smov 0  }
   0x3 LB: > { %s627_s13 = sadd.s32 4294967295, %s584_s12   ;;  %s395_s14 = sadd.s32 4294967294, %s584_s12   ;;  %s584_s12 = sphi %s612_s12, %s755_s12   ;;  %s580_s11 = sphi %s610_s11, %s754_s11   ;;  %s576_s10 = sphi %s608_s10, %s753_s10   ;;  %s572_s9 = sphi %s606_s9, %s752_s9  }
   0x4   : > { %s631_s15 = sadd.s32 1, %s584_s12   ;;  %s69_s16 = sadd.s32 1, %s580_s11 }
   0x5   : > { %s66_s17 = ssub.s32 %s584_s12, %s631_s15  ;;  %p79_p0 = scmp.ne.s32.totalorder %s580_s11, %s576_s10 }
   0x6   : > { %p67_p1 = scmp.eq.s32.totalorder %s66_s17, 0  ;;  %p80_p2 = scmp.eq.s32.totalorder %s627_s13, 2 }
   0x7   : > { %p85_p3 = scmp.ne.s32.totalorder %s576_s10, %s572_s9  ;;  %p86_p4 = scmp.eq.s32.totalorder %s395_s14, 2 }
   0x8   : > { %s642_s18 = scalar_select %p67_p1, %s580_s11, %s69_s16  }
   0x9   : > { %p644_p5 = por %p80_p2, %p79_p0  ;;  %p648_p6 = por %p86_p4, %p85_p3 }
   0xa   : > { %p398_p7 = scmp.ge.s32.totalorder %s584_s12, 1  ;;  %p124_p8 = scmp.lt.s32.totalorder %s584_s12, 4 }
   0xc   : > { %p125_p9 = pnand %p398_p7, %p124_p8 }
   0xd   : > { %s655_s21 = sshll.u32 (!%p125_p9), %s627_s13, 2  ;;  %v199_v0 = vld [vmem:[%s748_s1] sm:$0xff] (!%p125_p9)  ;;  %v200_v1 = vld [vmem:[%s748_s1 + $0x8] sm:$0xff] (!%p125_p9)  ;;  %v201_v2 = vld [vmem:[%s748_s1 + $0x10] sm:$0xff] (!%p125_p9)  ;;  %v586_v3 = vmov (!%p125_p9), 0   ;;  %v173_v17 = vlaneseq (!%p125_p9)  ;;  %vm207_vm0 = vcmask (!%p125_p9), 523264  }
   0xe   : > { %128 = sbr.rel (%p125_p9) target bundleno = 405 (0x195), region = 28  ;;  %521 = vset.pattern.permute.xlu1 (!%p125_p9), %v586_v3  ;;  %520 = vset.pattern.permute.xlu0 (!%p125_p9), %v586_v3  ;;  %p155_p10 = scmp.lt.s32.totalorder (!%p125_p9), %s655_s21, 8  ;;  %v454_v4 = vpack.c.bf16 (!%p125_p9), %v200_v1, %v199_v0  ;;  %v202_v5 = vld [vmem:[%s748_s1 + $0x18] sm:$0xff] (!%p125_p9)  ;;  %v203_v7 = vld [vmem:[%s748_s1 + $0x20] sm:$0xff] (!%p125_p9)  ;;  %v204_v8 = vld [vmem:[%s748_s1 + $0x28] sm:$0xff] (!%p125_p9)  ;;  %v587_v21 = vmov (!%p125_p9), 0.0  }
   0xf   : > { %v458_v6 = vpack.c.bf16 (!%p125_p9), %v202_v5, %v201_v2  ;;  %v462_v9 = vpack.c.bf16 (!%p125_p9), %v204_v8, %v203_v7  ;;  %v205_v10 = vld [vmem:[%s748_s1 + $0x30] sm:$0xff] (!%p125_p9)  ;;  %v206_v13 = vld [vmem:[%s748_s1 + $0x38] sm:$0xff] (!%p125_p9)  ;;  %v174_v18 = vand.u32 (!%p125_p9), 127, %v173_v17  ;;  %s147_s25 = sand.u32 (!%p125_p9), 1, %s576_s10  }
  0x10   : > { %455 = vmatprep.subr.bf16.mxu0 (!%p125_p9), %v454_v4  ;;  %470 = vmatprep.subr.bf16.mxu1 (!%p125_p9), %v454_v4  ;;  %v466_v16 = vpack.c.bf16 (!%p125_p9), %v206_v13, %v205_v10  ;;  %s399_s26 = sshll.u32 (!%p125_p9), %s147_s25, 5  ;;  %s687_s28 = scalar_lea.sflag (!%p125_p9), [#allocation3], %s147_s25 }
  0x11   : > { %457 = vmatpush3.bf16.msra.mxu0 (!%p125_p9), %v454_v4  ;;  %474 = vmatpush3.bf16.msra.mxu1 (!%p125_p9), %v454_v4  ;;  %s149_s27 = scalar_lea.vmem (!%p125_p9), [#allocation2], %s399_s26 }
  0x12   : > { %459 = vmatprep.subr.bf16.mxu0 (!%p125_p9), %v458_v6  ;;  %471 = vmatprep.subr.bf16.mxu1 (!%p125_p9), %v458_v6 }
  0x15   : > { %s156_s30 = scalar_select %p155_p10, %s655_s21, 8  ;;  %461 = vmatpush3.bf16.msra.mxu0 %v458_v6  ;;  %475 = vmatpush3.bf16.msra.mxu1 %v458_v6 }
  0x16   : > { %463 = vmatprep.subr.bf16.mxu0 %v462_v9  ;;  %472 = vmatprep.subr.bf16.mxu1 %v462_v9  ;;  %s322_s29 = ssub.s32 (%p644_p5), 9, %s655_s21 }
  0x17   : > { %s401_s7 = sshll.u32 %s156_s30, 3  ;;  %p323_p11 = scmp.lt.s32.totalorder (%p644_p5), %s322_s29, 4 }
  0x18   : > { %s158_s16 = scalar_lea.vmem %s747_s0, %s401_s7 }
  0x19   : > { %v170_v11 = vld [vmem:[%s158_s16 + $0x8] sm:$0xff]  ;;  %v169_v12 = vld [vmem:[%s158_s16] sm:$0xff]  ;;  %v172_v14 = vld [vmem:[%s158_s16 + $0x18] sm:$0xff]  ;;  %465 = vmatpush3.bf16.msra.mxu0 %v462_v9  ;;  %476 = vmatpush3.bf16.msra.mxu1 %v462_v9 }
  0x1a   : > { %179 = vperm.xlu1 %521, %v170_v11   ;;  %176 = vperm.xlu0 %520, %v169_v12   ;;  %v171_v15 = vld [vmem:[%s158_s16 + $0x10] sm:$0xff] }
  0x1b   : > { %467 = vmatprep.subr.bf16.mxu0 %v466_v16  ;;  %473 = vmatprep.subr.bf16.mxu1 %v466_v16 }
  0x1d   : > { %469 = vmatpush3.bf16.msra.mxu0 %v466_v16  ;;  %477 = vmatpush3.bf16.msra.mxu1 %v466_v16 }
  0x1e   : > { %185 = vperm.xlu1 %521, %v172_v14   ;;  %182 = vperm.xlu0 %520, %v171_v15  }
  0x99   : > { %v180_v19 = vpop.permute.xlu1 %179  ;;  %v177_v20 = vpop.permute.xlu0 %176 }
  0x9a   : > { %vm188_vm1 = vcmp.eq.s32.totalorder %v180_v19, %v174_v18  ;;  %vm187_vm2 = vcmp.eq.s32.totalorder %v177_v20, %v174_v18 }
  0x9b   : > { %v403_v22 = vsel %vm188_vm1, 1.0, %v587_v21  ;;  %v402_v23 = vsel %vm187_vm2, 1.0, %v587_v21 }
  0x9c   : > { %448 = vmatprep.mubr.msk.f32.mxu0 %vm207_vm0, %v402_v23 }
  0x9d   : > { %v186_v24 = vpop.permute.xlu1 %185  ;;  %449 = vmatmul.mubr.msk.f32.vlgmr.msra.gmra.mrb[0].mxu0 %vm207_vm0, %v403_v22  ;;  %v183_v25 = vpop.permute.xlu0 %182 }
  0x9e   : > { %vm190_vm3 = vcmp.eq.s32.totalorder %v186_v24, %v174_v18  ;;  %vm189_vm4 = vcmp.eq.s32.totalorder %v183_v25, %v174_v18 }
  0x9f   : > { %v405_v26 = vsel %vm190_vm3, 1.0, %v587_v21  ;;  %v404_v27 = vsel %vm189_vm4, 1.0, %v587_v21 }
  0xa0   : > { %451 = vmatprep.mubr.msk.f32.mxu1 %vm207_vm0, %v404_v27 }
  0xa1   : > { %452 = vmatmul.mubr.msk.f32.vlgmr.msra.gmra.mrb[0].mxu1 %vm207_vm0, %v405_v26 }
 0x170   : > { %v450_v28 = vpop.f32.mrb[0].mxu0 }
 0x171   : > { %v306_v29 = vmul.f32 11.313708, %v450_v28  ;;  %v286_v30 = vpop.f32.mrb[1].mxu0 }
 0x172   : > { %v305_v31 = vmul.f32 11.313708, %v286_v30  ;;  %320 = sbr.rel (!%p644_p5) target bundleno = 405 (0x195), region = 32 }
 0x173   : > { %310 = vst [vmem:[%s149_s27 + $0x8] sm:$0xff] %v306_v29 }
 0x174   : > { %309 = vst [vmem:[%s149_s27] sm:$0xff] %v305_v31  ;;  %v453_v32 = vpop.f32.mrb[0].mxu1 }
 0x175   : > { %v308_v33 = vmul.f32 11.313708, %v453_v32  ;;  %v296_v34 = vpop.f32.mrb[1].mxu1 }
 0x176   : > { %v307_v35 = vmul.f32 11.313708, %v296_v34 }
 0x177   : > { %312 = vst [vmem:[%s149_s27 + $0x18] sm:$0xff] %v308_v33 }
 0x178   : > { %311 = vst [vmem:[%s149_s27 + $0x10] sm:$0xff] %v307_v35 }
 0x179   : > { %s757_s29 = smov (!%p323_p11, %s322_s29), 4 }
 0x17a   : > { %s692_s30 = sshll.u32 %s757_s29, 7 }
 0x17b   : > { %s327_s3 = ssub.s32 512, %s692_s30 }
 0x17c   : > { %328 = vsyncadd %s687_s28, %s327_s3  ;;  %p413_p12 = scmp.ne.s32.totalorder %s692_s30, 0  ;;  %s419_s4 = sshll.u32 %s627_s13, 9 }
 0x17d   : > { %s701_s19 = scalar_lea.hbm %s749_s2, %s419_s4  ;;  %s333_s7 = sshll.u32 %s149_s27, 4  ;;  %s703_s7 = int_to_ptr.vmem [resolvable:$true] %s333_s7 }
 0x17e   : > { %s522_s21 = scalar_lea.vmem %s703_s7, %s692_s30  ;;  %s588_s8 = smov [#allocation2]  }
 0x17f   : > { %p523_p13 = scmp.ne.s32.totalorder %s703_s7, %s522_s21  ;;  %s526_s14 = sshll.u32 %s588_s8, 4  ;;  %s527_s14 = int_to_ptr.vmem [resolvable:$false] %s526_s14 }
 0x180   : > { %s528_s13 = scalar_lea.vmem %s527_s14, 1024  ;;  %p529_p2 = scmp.lt.s32.totalorder %s703_s7, %s527_s14 }
 0x181   : > { %p524_p0 = pnand %p523_p13, %p413_p12  ;;  %p530_p3 = scmp.lt.s32.totalorder %s528_s13, %s522_s21 }
 0x183   : > { %p525_p1 = pneg %p524_p0  ;;  %p531_p4 = por %p530_p3, %p529_p2 }
 0x185   : > { %p532_p5 = pnand %p531_p4, %p525_p1 }
 0x187   : > { %535 = shalt.err (!%p532_p5)
}
 0x188   : > { %s536_s16 = scalar_lea.hbm %s701_s19, %s692_s30  ;;  %s540_s23 = scalar_lea.hbm %s749_s2, 1152 }
 0x189   : > { %p537_p7 = scmp.ne.s32.totalorder %s701_s19, %s536_s16  ;;  %p541_p10 = scmp.lt.u32.totalorder %s701_s19, %s749_s2 }
 0x18a   : > { %p542_p11 = scmp.lt.u32.totalorder %s540_s23, %s536_s16  ;;  %p544_p0 = scmp.lt.u32.totalorder %s536_s16, %s701_s19 }
 0x18b   : > { %p538_p8 = pnand %p537_p7, %p413_p12 }
 0x18c   : > { %p543_p13 = por %p542_p11, %p541_p10 }
 0x18d   : > { %p539_p9 = pneg %p538_p8 }
 0x18e   : > { %p545_p1 = por %p544_p0, %p543_p13 }
 0x190   : > { %p546_p2 = pnand %p545_p1, %p539_p9 }
 0x192   : > { %549 = shalt.err (!%p546_p2)
}
 0x193   : > { %s589_s26 = smov 128   ;;  %s590_s27 = smov 8  }
 0x194   : > { %339 = dma.vmem_to_hbm [thread:$0]  (%p413_p12), %s703_s7, %s692_s30, %s701_s19, %s687_s28, %s589_s26, %s589_s26, %s590_s27  }
 0x195 PF: > { %p483_p3 = scmp.ge.s32.totalorder %s584_s12, 2  ;;  %s348_s29 = sand.u32 1, %s572_s9  }
 0x196   : > { %s349_s3 = scalar_lea.sflag [#allocation3], %s348_s29 }
 0x197   : > { %p480_p4 = pnand %p483_p3, %p648_p6 }
 0x199   : > { %567 = dma.done.wait (!%p480_p4), %s349_s3, 512  }
 0x19a   : > { %569 = vsyncadd (!%p480_p4), %s349_s3, 4294966784  ;;  %p12_p5 = scmp.ge.s32.totalorder %s631_s15, 5   ;;  %s752_s9 = smov %s576_s10 }
 0x19b   : > { %s753_s10 = smov %s580_s11  ;;  %s754_s11 = smov %s642_s18 }
 0x19c   : > { %s755_s12 = smov %s631_s15  ;;  %14 = sbr.rel (!%p12_p5) target bundleno = 3 (0x3), region = 63 }
 0x1a3   :  { %354 = vsyncpa [#allocation3], 1 }
 0x1a4   :  { %356 = vsyncpa [#allocation3 + $0x1], 1 }

</bundles_post_ra>
